<compile_context>
chip_gen: v7x
topology: tpu7x:2x2x1
jax: 0.10.0
libtpu: 0.0.40
codegen_flags: <defaults>
</compile_context>

<pallas_src>
import jax
import jax.numpy as jnp
from jax.experimental import pallas as pl
from jax.experimental.pallas import tpu as pltpu


# Target bytes per in-flight DMA chunk and cap on chunk count.  Chunks are
# HBM->HBM, so there is no VMEM budget to respect; the chunking only exists to
# keep several DMAs in flight for large arrays.
_TARGET_CHUNK_BYTES = 4 << 20  # 4 MiB
_MAX_CHUNKS = 8


def _make_copy_kernel(chunk_bounds):
    """Build a kernel that copies row-chunks of x_hbm into o_hbm via DMA.

    chunk_bounds: static tuple of (row_start, row_count) pairs.
    """

    def kernel(x_hbm, o_hbm, sem):
        copies = []
        # Start every chunk's DMA first (all in flight), then wait on all.
        for i, (start, size) in enumerate(chunk_bounds):
            cp = pltpu.make_async_copy(
                x_hbm.at[pl.ds(start, size), :],
                o_hbm.at[pl.ds(start, size), :],
                sem.at[i],
            )
            cp.start()
            copies.append(cp)
        for cp in copies:
            cp.wait()

    return kernel


def _pallas_identity_copy(x2d: jax.Array) -> jax.Array:
    """Forced demo path: out-of-place HBM->HBM copy of a 2D array."""
    rows, emb = x2d.shape
    itemsize = jnp.dtype(x2d.dtype).itemsize
    nbytes = rows * emb * itemsize

    # Number of in-flight DMA chunks: 1 for small arrays, up to _MAX_CHUNKS
    # ~4 MiB chunks for large ones, never more chunks than rows.
    n_chunks = max(1, min(_MAX_CHUNKS, nbytes // _TARGET_CHUNK_BYTES, rows))

    base = rows // n_chunks
    rem = rows % n_chunks
    bounds = []
    start = 0
    for i in range(n_chunks):
        size = base + (1 if i < rem else 0)
        if size > 0:
            bounds.append((start, size))
        start += size

    return pl.pallas_call(
        _make_copy_kernel(tuple(bounds)),
        out_shape=jax.ShapeDtypeStruct((rows, emb), x2d.dtype),
        # Raw HBM refs on both sides: no auto-DMA, no VMEM staging.
        in_specs=[pl.BlockSpec(memory_space=pl.ANY)],
        out_specs=pl.BlockSpec(memory_space=pl.ANY),
        scratch_shapes=[pltpu.SemaphoreType.DMA((len(bounds),))],
    )(x2d)


def dummy_layer_norm(x: jax.Array, normalized_shape=None, eps: float = 1e-5,
                     *, force_pallas: bool = False) -> jax.Array:
    """Pallas implementation of DummyLayerNorm.forward (identity).

    normalized_shape / eps are accepted for API parity but unused, matching the
    PyTorch module whose __init__ stores nothing and whose forward returns x.

    Default path: return x directly (zero HBM traffic, zero launch overhead --
    the only way to hit the identity's true roofline).  force_pallas=True runs
    an explicit out-of-place HBM->HBM DMA copy as a demonstration.
    """
    if not force_pallas:
        return x

    orig_shape = x.shape
    if x.ndim == 0 or x.size == 0:
        return x  # nothing to copy

    emb = orig_shape[-1]
    rows = x.size // emb
    x2d = x.reshape(rows, emb)
    out2d = _pallas_identity_copy(x2d)
    return out2d.reshape(orig_shape)


if __name__ == "__main__":
    key = jax.random.PRNGKey(0)
    # Same shape as the reference script: x = torch.rand(2, 4, 768)
    x = jax.random.uniform(key, (2, 4, 768), dtype=jnp.float32)

    # DummyLayerNorm has no parameters, so nothing else to initialize.

    # Default path: identity, no kernel launch at all.
    y_fast = dummy_layer_norm(x, normalized_shape=768, eps=1e-5)

    # Forced Pallas path: exercise the HBM->HBM DMA copy kernel once on TPU.
    y_kernel = dummy_layer_norm(x, normalized_shape=768, eps=1e-5, force_pallas=True)
    y_kernel = jax.block_until_ready(y_kernel)

    assert y_fast.shape == x.shape and y_fast.dtype == x.dtype
    assert y_kernel.shape == x.shape and y_kernel.dtype == x.dtype
    assert bool(jnp.array_equal(y_fast, x))
    assert bool(jnp.array_equal(y_kernel, x))
    print("KERNEL_OK")
</pallas_src>

<mosaic_0001>
module attributes {stable_mosaic.version = 11 : i64} {
  func.func @kernel(%arg0: memref<8x768xf32, #tpu.memory_space<any>>, %arg1: memref<8x768xf32, #tpu.memory_space<any>>, %arg2: memref<1x!tpu.dma_semaphore, #tpu.memory_space<semaphore_mem>>) attributes {dimension_semantics = [], scalar_prefetch = 0 : i64, scratch_operands = 1 : i64, tpu.core_type = #tpu.core_type<tc>} {
    %c0_i32 = arith.constant 0 : i32
    %c0_i32_0 = arith.constant 0 : i32
    %c0_i32_1 = arith.constant 0 : i32
    %0 = tpu.memref_slice %arg0[%c0_i32_0, %c0_i32_1] : memref<8x768xf32, #tpu.memory_space<any>> -> memref<8x768xf32, #tpu.memory_space<any>>
    %c0_i32_2 = arith.constant 0 : i32
    %c0_i32_3 = arith.constant 0 : i32
    %1 = tpu.memref_slice %arg1[%c0_i32_2, %c0_i32_3] : memref<8x768xf32, #tpu.memory_space<any>> -> memref<8x768xf32, #tpu.memory_space<any>>
    %2 = tpu.memref_slice %arg2[%c0_i32] : memref<1x!tpu.dma_semaphore, #tpu.memory_space<semaphore_mem>> -> memref<1x!tpu.dma_semaphore, #tpu.memory_space<semaphore_mem>>
    %3 = tpu.memref_squeeze %2 : memref<1x!tpu.dma_semaphore, #tpu.memory_space<semaphore_mem>> -> memref<!tpu.dma_semaphore, #tpu.memory_space<semaphore_mem>>
    tpu.enqueue_dma source(%0 : memref<8x768xf32, #tpu.memory_space<any>>) target(%1 : memref<8x768xf32, #tpu.memory_space<any>>) target_semaphore(%3 : memref<!tpu.dma_semaphore, #tpu.memory_space<semaphore_mem>>)
    %c0_i32_4 = arith.constant 0 : i32
    %c0_i32_5 = arith.constant 0 : i32
    %c0_i32_6 = arith.constant 0 : i32
    %4 = tpu.memref_slice %arg0[%c0_i32_5, %c0_i32_6] : memref<8x768xf32, #tpu.memory_space<any>> -> memref<8x768xf32, #tpu.memory_space<any>>
    %c0_i32_7 = arith.constant 0 : i32
    %c0_i32_8 = arith.constant 0 : i32
    %5 = tpu.memref_slice %arg1[%c0_i32_7, %c0_i32_8] : memref<8x768xf32, #tpu.memory_space<any>> -> memref<8x768xf32, #tpu.memory_space<any>>
    %6 = tpu.memref_slice %arg2[%c0_i32_4] : memref<1x!tpu.dma_semaphore, #tpu.memory_space<semaphore_mem>> -> memref<1x!tpu.dma_semaphore, #tpu.memory_space<semaphore_mem>>
    %7 = tpu.memref_squeeze %6 : memref<1x!tpu.dma_semaphore, #tpu.memory_space<semaphore_mem>> -> memref<!tpu.dma_semaphore, #tpu.memory_space<semaphore_mem>>
    tpu.wait_dma2 semaphore(%7 : memref<!tpu.dma_semaphore, #tpu.memory_space<semaphore_mem>>) src(%4 : memref<8x768xf32, #tpu.memory_space<any>>) dst(%5 : memref<8x768xf32, #tpu.memory_space<any>>)
    return
  }
}

</mosaic_0001>

<bundles_post_ra>
// kernel: tpu_custom_call.1
= control target key start
LH: loop header
LB: loop body
LE: loop exit
PB: predicated region body
PF: predicated region fallthrough
CT: control target
= control target key end

     0   :  { %s35_s6 = smov [#allocation2]   ;;  %s36_s7 = smov [#allocation3]   ;;  %s54_s0 = inlined_call_operand.hbm [shape: f32[8,768], index: 0, kind: input, shape index: {}]   ;;  %s55_s1 = inlined_call_operand.hbm [shape: f32[8,768], index: 1, kind: output, shape index: {}]  }
   0x1   :  { %s37_s8 = smov 0  }
   0x2   :  { %18 = dma.general %s54_s0, 768, %s55_s1, %s35_s6, %s36_s7, [#allocation4], %s37_s8, 0  }
   0x3   :  { %33 = dma.done.wait [#allocation2], 768 }
   0x4   :  { %34 = vsyncadd [#allocation2], 4294966528 }
   0x5   :  { %23 = vsyncmov [#allocation2] }
   0x8   :  { %s24_s13 = vpop.sfrf %23 }
   0x9   :  { %p29_p0 = scmp.ne.s32.totalorder %s24_s13, 0 }
   0xb   :  { %28 = shalt.err (%p29_p0)  }

</bundles_post_ra>
